<compile_context>
chip_gen: v7x
topology: tpu7x:2x2x1
jax: 0.10.0
libtpu: 0.0.40
codegen_flags: <defaults>
</compile_context>

<pallas_src>
import jax
import jax.numpy as jnp
from jax.experimental import pallas as pl
from jax.experimental.pallas import tpu as pltpu


def _round_up(x, m):
    return ((x + m - 1) // m) * m


# Conservative per-call VMEM budget for tile sizing: well under the smallest default
# scoped-VMEM limit across generations (v5e ~16 MiB, v6e/v7x 32 MiB), so the
# double-buffered pipeline never spills and no vmem_limit_bytes override is needed.
_VMEM_BUDGET_BYTES = 12 * 1024 * 1024


def _choose_batch_tile(B, D, itemsize, block_b):
    """Batch (lane) tile size: multiple of 256, VMEM-budgeted, >=2 grid steps for big B."""
    per_lane_bytes = 2 * D * itemsize + 2 * 4          # 2x input buffers + 2x f32 output buffers
    vmem_cap = max(256, (_VMEM_BUDGET_BYTES // per_lane_bytes) // 256 * 256)
    two_core_cap = _round_up(-(-B // 2), 256)          # keep nb >= 2 when B is large
    return max(256, min(_round_up(block_b, 256), vmem_cap, two_core_cap))


def _fused_head_kernel(b_eff_ref, x_ref, w_ref, o_ref):
    # x_ref    : [TB, D] batch tile of the input in its native HBM layout (no transpose)
    # w_ref    : [1, D]  fused weight row (lane-dense, same block every grid step)
    # b_eff_ref: [1, 1]  fused bias scalar in SMEM
    # o_ref    : [1, TB] lane-dense output tile (unmasked vector stores)
    #
    # z[1, TB] = w_row[1, D] . x_tile[TB, D]^T  -- contraction on both operands' last
    # dim, so the batch fills the MXU N dimension and no transposed copy of x is ever
    # materialized (wrapper or kernel).  Accumulation forced to f32.
    z = jax.lax.dot_general(
        w_ref[...], x_ref[...],
        dimension_numbers=(((1,), (1,)), ((), ())),
        preferred_element_type=jnp.float32)
    o_ref[...] = jax.nn.sigmoid(z + b_eff_ref[0, 0])   # VPU add + EUP sigmoid


def fuse_head_params(w1, b1, w2, b2, *, dtype=jnp.float32):
    """One-time algebraic fusion of hl_1 / hl_2.  Call once, reuse across inference steps.

    w1: [D, H], b1: [1, H], w2: [H, 1], b2: [1, 1]  (pre-transposed vs nn.Linear storage)
    Returns (w_row [1, D] in `dtype`, b_eff [1, 1] in f32).  Fusion math stays in f32.
    """
    w_eff = jnp.dot(w1.astype(jnp.float32), w2.astype(jnp.float32),
                    preferred_element_type=jnp.float32)                    # [D, 1]
    b_eff = jnp.dot(b1.astype(jnp.float32), w2.astype(jnp.float32),
                    preferred_element_type=jnp.float32) + b2.astype(jnp.float32)
    return jnp.transpose(w_eff).astype(dtype), b_eff.astype(jnp.float32)


def binary_classification_head_fused(x, w_row, b_eff, *, block_b=16384,
                                      core_parallel=False):
    """x: [B, input_dim] (f32 or bf16) -> [B] f32 sigmoid probabilities (eval-mode forward)."""
    B, D = x.shape
    w_row = w_row.astype(x.dtype)          # consistent-dtype MXU operands (no-op if pre-fused)
    b_eff = b_eff.astype(jnp.float32)

    tb = _choose_batch_tile(B, D, jnp.dtype(x.dtype).itemsize, block_b)
    nb = pl.cdiv(B, tb)                    # partial last block: OOB input rows feed only
                                           # OOB output lanes, which Pallas masks on store.

    if core_parallel:
        # v7x: shard the independent batch tiles across the chip's two TensorCores.
        semantics = (pltpu.CORE_PARALLEL,)
    else:
        semantics = ("parallel",)

    out = pl.pallas_call(
        _fused_head_kernel,
        out_shape=jax.ShapeDtypeStruct((1, B), jnp.float32),
        grid_spec=pltpu.PrefetchScalarGridSpec(
            num_scalar_prefetch=0,
            grid=(nb,),
            in_specs=[
                # fused bias: a single (1, 1) scalar in SMEM (no padded VMEM tile)
                pl.BlockSpec((1, 1), lambda i: (0, 0),
                             memory_space=pltpu.MemorySpace.SMEM),
                # batch tile of x in its native [B, D] layout (no wrapper transpose/pad)
                pl.BlockSpec((tb, D), lambda i: (i, 0)),
                # fused weight row, same block every grid step (stays VMEM-resident)
                pl.BlockSpec((1, D), lambda i: (0, 0)),
            ],
            out_specs=pl.BlockSpec((1, tb), lambda i: (0, i)),
        ),
        compiler_params=pltpu.CompilerParams(dimension_semantics=semantics),
    )(b_eff, x, w_row)

    # torch.squeeze(pred, 1): [1, B] -> [B]
    return out[0]


def binary_classification_head(x, w1, b1, w2, b2, **kwargs):
    """Convenience wrapper (fuses then calls). For serving, fuse once with
    fuse_head_params() and call binary_classification_head_fused() directly."""
    w_row, b_eff = fuse_head_params(w1, b1, w2, b2, dtype=x.dtype)
    return binary_classification_head_fused(x, w_row, b_eff, **kwargs)


def init_params(key, input_dim, hidden_dim):
    """Deterministic init mimicking nn.Linear default (U[-1/sqrt(fan_in), +1/sqrt(fan_in)])."""
    k1, k2, k3, k4 = jax.random.split(key, 4)
    bound1 = 1.0 / jnp.sqrt(input_dim)
    bound2 = 1.0 / jnp.sqrt(hidden_dim)
    w1 = jax.random.uniform(k1, (input_dim, hidden_dim), jnp.float32, -bound1, bound1)
    b1 = jax.random.uniform(k2, (1, hidden_dim), jnp.float32, -bound1, bound1)
    w2 = jax.random.uniform(k3, (hidden_dim, 1), jnp.float32, -bound2, bound2)
    b2 = jax.random.uniform(k4, (1, 1), jnp.float32, -bound2, bound2)
    return w1, b1, w2, b2


if __name__ == "__main__":
    INPUT_DIM, HIDDEN_DIM = 32, 32   # head input_dim = 2 * output_dim (output_dim = 16)

    key = jax.random.PRNGKey(0)
    kx, kp, kx2 = jax.random.split(key, 3)
    w1, b1, w2, b2 = init_params(kp, INPUT_DIM, HIDDEN_DIM)

    def reference(x):
        # un-fused two-step eval-mode forward (dropout = identity)
        return jax.nn.sigmoid((x @ w1 + b1) @ w2 + b2)[:, 0]

    # fuse hl_1 / hl_2 ONCE (hoisted out of the per-batch path), reuse across calls
    w_row_f32, b_eff = fuse_head_params(w1, b1, w2, b2, dtype=jnp.float32)

    # small batch: single partial 256-lane tile, no padding / transpose copies anywhere
    x_small = jax.random.normal(kx, (8, INPUT_DIM), jnp.float32)
    pred_small = jax.block_until_ready(
        binary_classification_head_fused(x_small, w_row_f32, b_eff))
    assert pred_small.shape == (8,)
    assert jnp.allclose(pred_small, reference(x_small), atol=1e-5, rtol=1e-5)

    # non-multiple-of-256 batch: exercises the multi-tile grid + masked partial last block
    x_big = jax.random.normal(kx2, (300, INPUT_DIM), jnp.float32)
    pred_big = jax.block_until_ready(
        binary_classification_head_fused(x_big, w_row_f32, b_eff))
    assert pred_big.shape == (300,)
    assert jnp.allclose(pred_big, reference(x_big), atol=1e-5, rtol=1e-5)

    # bf16 activations: halves HBM bytes for this memory-bound kernel; f32 accumulation
    w_row_bf16, _ = fuse_head_params(w1, b1, w2, b2, dtype=jnp.bfloat16)
    pred_bf16 = jax.block_until_ready(
        binary_classification_head_fused(x_big.astype(jnp.bfloat16), w_row_bf16, b_eff))
    assert pred_bf16.shape == (300,)
    assert jnp.allclose(pred_bf16, reference(x_big), atol=1e-2, rtol=1e-2)

    print("KERNEL_OK")
</pallas_src>

<mosaic_0001>
module attributes {stable_mosaic.version = 11 : i64} {
  func.func @_fused_head_kernel(%arg0: i32, %arg1: memref<1x1xf32, #tpu.memory_space<smem>>, %arg2: memref<256x32xf32, #tpu.memory_space<vmem>>, %arg3: memref<1x32xf32, #tpu.memory_space<vmem>>, %arg4: memref<1x256xf32, #tpu.memory_space<vmem>>) attributes {dimension_semantics = [#tpu.dimension_semantics<parallel>], iteration_bounds = array<i64: 1>, scalar_prefetch = 0 : i64, scratch_operands = 0 : i64, tpu.core_type = #tpu.core_type<tc>, window_params = [{transform_indices = @transform_0, window_bounds = array<i64: 1, 1>}, {transform_indices = @transform_1, window_bounds = array<i64: 256, 32>}, {pipeline_mode = #tpu.pipeline_mode<synchronous>, transform_indices = @transform_2, window_bounds = array<i64: 1, 32>}, {transform_indices = @transform_3, window_bounds = array<i64: 1, 256>}]} {
    %c0 = arith.constant 0 : index
    %c0_0 = arith.constant 0 : index
    %0 = vector.load %arg3[%c0, %c0_0] : memref<1x32xf32, #tpu.memory_space<vmem>>, vector<1x32xf32>
    %c0_1 = arith.constant 0 : index
    %c0_2 = arith.constant 0 : index
    %1 = vector.load %arg2[%c0_1, %c0_2] : memref<256x32xf32, #tpu.memory_space<vmem>>, vector<256x32xf32>
    %cst = arith.constant dense<0.000000e+00> : vector<1x256xf32>
    %2 = tpu.matmul %0, %1, %cst {dimension_numbers = #tpu.dot_dimension_numbers<[1], [1], [0], [0], [0, 0, 1, 0], [], []>} : vector<1x32xf32>, vector<256x32xf32>, vector<1x256xf32> -> vector<1x256xf32>
    %c0_3 = arith.constant 0 : index
    %c0_4 = arith.constant 0 : index
    %3 = memref.load %arg1[%c0_3, %c0_4] : memref<1x1xf32, #tpu.memory_space<smem>>
    %4 = vector.broadcast %3 : f32 to vector<1x256xf32>
    %5 = arith.addf %2, %4 : vector<1x256xf32>
    %6 = arith.negf %5 : vector<1x256xf32>
    %7 = math.exp %6 : vector<1x256xf32>
    %cst_5 = arith.constant 1.000000e+00 : f32
    %8 = vector.broadcast %cst_5 : f32 to vector<1x256xf32>
    %9 = arith.addf %8, %7 : vector<1x256xf32>
    %10 = arith.divf %8, %9 : vector<1x256xf32>
    %c0_6 = arith.constant 0 : index
    %c0_7 = arith.constant 0 : index
    %11 = vector.load %arg4[%c0_6, %c0_7] : memref<1x256xf32, #tpu.memory_space<vmem>>, vector<1x256xf32>
    tpu.vector_store %arg4[%c0_6, %c0_7], %10 {strides = array<i32>} : memref<1x256xf32, #tpu.memory_space<vmem>>, vector<1x256xf32>,
    return
  }
  func.func @transform_0(%arg0: i32) -> (i32, i32) {
    %c0_i32 = arith.constant 0 : i32
    %c0_i32_0 = arith.constant 0 : i32
    %c0_i32_1 = arith.constant 0 : i32
    return %c0_i32, %c0_i32_0 : i32, i32
  }
  func.func @transform_1(%arg0: i32) -> (i32, i32) {
    %c0_i32 = arith.constant 0 : i32
    %c0_i32_0 = arith.constant 0 : i32
    return %arg0, %c0_i32 : i32, i32
  }
  func.func @transform_2(%arg0: i32) -> (i32, i32) {
    %c0_i32 = arith.constant 0 : i32
    %c0_i32_0 = arith.constant 0 : i32
    %c0_i32_1 = arith.constant 0 : i32
    return %c0_i32, %c0_i32_0 : i32, i32
  }
  func.func @transform_3(%arg0: i32) -> (i32, i32) {
    %c0_i32 = arith.constant 0 : i32
    %c0_i32_0 = arith.constant 0 : i32
    return %c0_i32, %arg0 : i32, i32
  }
}

</mosaic_0001>

<bundles_post_ra>
// kernel: tpu_custom_call.1
= control target key start
LH: loop header
LB: loop body
LE: loop exit
PB: predicated region body
PF: predicated region fallthrough
CT: control target
= control target key end

     0   :  { %9 = vsyncpa [#allocation4], 0  ;;  %s559_s0 = inlined_call_operand.<no memory space> [shape: f32[1,1], index: 0, kind: input, shape index: {}]   ;;  %s560_s1 = inlined_call_operand.hbm [shape: f32[8,32], index: 1, kind: input, shape index: {}]   ;;  %s561_s2 = inlined_call_operand.vmem [shape: f32[1,32], index: 2, kind: input, shape index: {}]   ;;  %s562_s3 = inlined_call_operand.hbm [shape: f32[1,8], index: 3, kind: output, shape index: {}]  }
   0x1   :  { %10 = vsyncpa [#allocation5], 0 }
   0x2   :  { %17 = vsyncadd [#allocation4], 3968  ;;  %s464_s12 = smov [#allocation3]   ;;  %s416_s16 = scalar_lea.hbm %s560_s1, 128 }
   0x3   :  { %s18_s13 = sshll.u32 %s464_s12, 4  ;;  %p417_p0 = scmp.ne.s32.totalorder %s560_s1, %s416_s16  ;;  %s19_s13 = int_to_ptr.vmem [resolvable:$true] %s18_s13 }
   0x4   :  { %p420_p1 = scmp.lt.u32.totalorder %s416_s16, %s560_s1 }
   0x6   :  { %p422_p2 = pnand %p420_p1, %p417_p0 }
   0x8   :  { %425 = shalt.err (!%p422_p2)
}
   0x9   :  { %s426_s21 = scalar_lea.vmem %s19_s13, 128  ;;  %s430_s22 = scalar_lea.vmem %s19_s13, 4096 }
   0xa   :  { %p427_p3 = scmp.ne.s32.totalorder %s19_s13, %s426_s21  ;;  %p431_p4 = scmp.lt.s32.totalorder %s19_s13, %s19_s13 }
   0xb   :  { %p432_p5 = scmp.lt.s32.totalorder %s430_s22, %s426_s21 }
   0xd   :  { %p433_p6 = por %p432_p5, %p431_p4 }
   0xf   :  { %p434_p7 = pnand %p433_p6, %p427_p3 }
  0x11   :  { %437 = shalt.err (!%p434_p7)
}
  0x12   :  { %s465_s23 = smov 128   ;;  %s466_s24 = smov 8  }
  0x13   :  { %24 = dma.hbm_to_vmem [thread:$0]  %s560_s1, 128, %s19_s13, [#allocation4], %s465_s23, %s465_s23, %s466_s24  }
  0x14   :  { %460 = dma.done.wait [#allocation4], 4096  }
  0x15   :  { %461 = vsyncadd [#allocation4], 4294963200  ;;  %vm65_vm0 = vcmask 261120   ;;  %v47_v1 = vld [vmem:[#allocation3 + $0x80] sm:$0xff]  ;;  %v48_v2 = vld [vmem:[#allocation3 + $0x88] sm:$0xff]  ;;  %v64_v50 = vstv %s559_s0  ;;  %v254_v63 = vlaneseq }
  0x16   :  { %vm503_vm1 = vmpackc.low %vm65_vm0, %vm65_vm0  ;;  %v31_v3 = vld [vmem:[#allocation3] sm:$0xff]  ;;  %v355_v4 = vpack.c.bf16 %v48_v2, %v47_v1  ;;  %v32_v5 = vld [vmem:[#allocation3 + $0x8] sm:$0xff]  ;;  %v467_v61 = vmov 1966171168  }
  0x17   :  { %v49_v6 = vld [vmem:[#allocation3 + $0x90] sm:$0xff]  ;;  %v50_v7 = vld [vmem:[#allocation3 + $0x98] sm:$0xff]  ;;  %v358_v8 = vpack.c.bf16 %v32_v5, %v31_v3  ;;  %v51_v12 = vld [vmem:[#allocation3 + $0xa0] sm:$0xff]  ;;  %v252_v62 = vunpack.c.l.s4 %v467_v61  ;;  %v255_v1 = vshrl.u32 %v254_v63, 7  ;;  %vm268_vm2 = vcmp.lt.s32.totalorder %v254_v63, 256 }
  0x18   :  { %v361_v9 = vpack.c.bf16 %v50_v7, %v49_v6  ;;  %357 = vmatprep.subr.msk.bf16.mxu0 %vm503_vm1, %v355_v4  ;;  %v33_v10 = vld [vmem:[#allocation3 + $0x10] sm:$0xff]  ;;  %v34_v11 = vld [vmem:[#allocation3 + $0x18] sm:$0xff]  ;;  %v52_v13 = vld [vmem:[#allocation3 + $0xa8] sm:$0xff] }
  0x19   :  { %360 = vmatpush3.bf16.xpose.msk.msra.mxu0 %vm503_vm1, %v358_v8  ;;  %v364_v14 = vpack.c.bf16 %v34_v11, %v33_v10  ;;  %v367_v15 = vpack.c.bf16 %v52_v13, %v51_v12  ;;  %v30_v16 = vld [vmem:[%s561_s2] sm:$0x1]  ;;  %v36_v18 = vld [vmem:[#allocation3 + $0x28] sm:$0xff]  ;;  %v53_v19 = vld [vmem:[#allocation3 + $0xb0] sm:$0xff]  ;;  %v253_v0 = vunpack.c.0.s8 %v252_v62 }
  0x1a   :  { %363 = vmatprep.subr.msk.bf16.mxu0 %vm503_vm1, %v361_v9  ;;  %353 = vmatprep.mubr.msk.f32.mxu0 %vm65_vm0, %v30_v16  ;;  %v35_v17 = vld [vmem:[#allocation3 + $0x20] sm:$0xff]  ;;  %v54_v20 = vld [vmem:[#allocation3 + $0xb8] sm:$0xff]  ;;  %v37_v23 = vld [vmem:[#allocation3 + $0x30] sm:$0xff] }
  0x1b   :  { %v370_v21 = vpack.c.bf16 %v36_v18, %v35_v17  ;;  %v373_v22 = vpack.c.bf16 %v54_v20, %v53_v19  ;;  %v38_v24 = vld [vmem:[#allocation3 + $0x38] sm:$0xff]  ;;  %v55_v25 = vld [vmem:[#allocation3 + $0xc0] sm:$0xff]  ;;  %v56_v26 = vld [vmem:[#allocation3 + $0xc8] sm:$0xff]  ;;  %v256_v3 = vsub.s32 %v253_v0, %v255_v1 }
  0x1c   :  { %v376_v27 = vpack.c.bf16 %v38_v24, %v37_v23  ;;  %v379_v28 = vpack.c.bf16 %v56_v26, %v55_v25  ;;  %v39_v29 = vld [vmem:[#allocation3 + $0x40] sm:$0xff]  ;;  %v40_v30 = vld [vmem:[#allocation3 + $0x48] sm:$0xff]  ;;  %v57_v31 = vld [vmem:[#allocation3 + $0xd0] sm:$0xff] }
  0x1d   :  { %v58_v32 = vld [vmem:[#allocation3 + $0xd8] sm:$0xff]  ;;  %v382_v33 = vpack.c.bf16 %v40_v30, %v39_v29  ;;  %v41_v35 = vld [vmem:[#allocation3 + $0x50] sm:$0xff]  ;;  %v59_v37 = vld [vmem:[#allocation3 + $0xe0] sm:$0xff] }
  0x1e   :  { %v385_v34 = vpack.c.bf16 %v58_v32, %v57_v31  ;;  %v42_v36 = vld [vmem:[#allocation3 + $0x58] sm:$0xff]  ;;  %v60_v38 = vld [vmem:[#allocation3 + $0xe8] sm:$0xff]  ;;  %v43_v41 = vld [vmem:[#allocation3 + $0x60] sm:$0xff] }
  0x1f   :  { %v388_v39 = vpack.c.bf16 %v42_v36, %v41_v35  ;;  %v391_v40 = vpack.c.bf16 %v60_v38, %v59_v37  ;;  %v44_v42 = vld [vmem:[#allocation3 + $0x68] sm:$0xff]  ;;  %v61_v43 = vld [vmem:[#allocation3 + $0xf0] sm:$0xff]  ;;  %v62_v44 = vld [vmem:[#allocation3 + $0xf8] sm:$0xff] }
  0x20   :  { %v394_v45 = vpack.c.bf16 %v44_v42, %v43_v41  ;;  %v397_v46 = vpack.c.bf16 %v62_v44, %v61_v43  ;;  %v45_v47 = vld [vmem:[#allocation3 + $0x70] sm:$0xff]  ;;  %v46_v48 = vld [vmem:[#allocation3 + $0x78] sm:$0xff] }
  0x21   :  { %366 = vmatpush3.bf16.xpose.msk.msra.mxu0 %vm503_vm1, %v364_v14  ;;  %v400_v49 = vpack.c.bf16 %v46_v48, %v45_v47 }
  0x22   :  { %369 = vmatprep.subr.msk.bf16.mxu0 %vm503_vm1, %v367_v15 }
  0x29   :  { %372 = vmatpush3.bf16.xpose.msk.msra.mxu0 %vm503_vm1, %v370_v21 }
  0x2a   :  { %375 = vmatprep.subr.msk.bf16.mxu0 %vm503_vm1, %v373_v22 }
  0x31   :  { %378 = vmatpush3.bf16.xpose.msk.msra.mxu0 %vm503_vm1, %v376_v27 }
  0x32   :  { %381 = vmatprep.subr.msk.bf16.mxu0 %vm503_vm1, %v379_v28 }
  0x39   :  { %384 = vmatpush3.bf16.xpose.msk.msra.mxu0 %vm503_vm1, %v382_v33 }
  0x3a   :  { %387 = vmatprep.subr.msk.bf16.mxu0 %vm503_vm1, %v385_v34 }
  0x41   :  { %390 = vmatpush3.bf16.xpose.msk.msra.mxu0 %vm503_vm1, %v388_v39 }
  0x42   :  { %393 = vmatprep.subr.msk.bf16.mxu0 %vm503_vm1, %v391_v40 }
  0x49   :  { %396 = vmatpush3.bf16.xpose.msk.msra.mxu0 %vm503_vm1, %v394_v45 }
  0x4a   :  { %399 = vmatprep.subr.msk.bf16.mxu0 %vm503_vm1, %v397_v46 }
  0x51   :  { %402 = vmatpush3.bf16.xpose.msk.msra.mxu0 %vm503_vm1, %v400_v49 }
  0x58   :  { %354 = vmatmul.mubr.msk.f32.vlgmr.msra.gmra.mrb[0].mxu0 %vm65_vm0, %v30_v16 }
 0x12b   :  { %v231_v51 = vpop.f32.mrb[0].mxu0 }
 0x12c   :  { %v232_v52 = vadd.f32 %v231_v51, %v64_v50  ;;  %v233_v53 = vpop.f32.mrb[1].mxu0 }
 0x12d   :  { %v234_v54 = vadd.f32 %v233_v53, %v64_v50 }
 0x12e   :  { %v319_v55 = vmul.f32 -1.442695, %v232_v52 }
 0x12f   :  { %v320_v56 = vmul.f32 -1.442695, %v234_v54 }
 0x130   :  { %408 = vpow2.f32 %v319_v55 }
 0x131   :  { %410 = vpow2.f32 %v320_v56 }
 0x13a   :  { %v409_v57 = vpop.eup %408 }
 0x13b   :  { %v411_v58 = vpop.eup %410  ;;  %v242_v59 = vadd.f32 1.0, %v409_v57 }
 0x13c   :  { %v243_v60 = vadd.f32 1.0, %v411_v58 }
 0x13d   :  { %412 = vrcp.f32 %v242_v59 }
 0x13e   :  { %414 = vrcp.f32 %v243_v60 }
 0x147   :  { %v413_v2 = vpop.eup %412 }
 0x148   :  { %v415_v4 = vpop.eup %414 }
 0x149   :  { %v250_v5 = vcombine.low %v413_v2, %v415_v4 }
 0x14b   :  { %v257_v6 = vrot.slane %v250_v5, %v256_v3 }
 0x14d   :  { %v264_v7 = vrot.slane %v257_v6, %v256_v3 }
 0x14f   :  { %270 = vst.msk [vmem:[#allocation6] sm:$0x3] %vm268_vm2, %v264_v7 }
 0x150   :  { %275 = vsyncadd [#allocation5], 16  ;;  %s468_s0 = smov [#allocation6]  }
 0x151   :  { %s277_s29 = sshll.u32 %s468_s0, 4  ;;  %s278_s29 = int_to_ptr.vmem [resolvable:$true] %s277_s29 }
 0x152   :  { %s438_s30 = scalar_lea.vmem %s278_s29, 16  ;;  %s442_s4 = scalar_lea.vmem %s278_s29, 32 }
 0x153   :  { %p439_p8 = scmp.ne.s32.totalorder %s278_s29, %s438_s30  ;;  %p443_p9 = scmp.lt.s32.totalorder %s278_s29, %s278_s29 }
 0x154   :  { %p444_p10 = scmp.lt.s32.totalorder %s442_s4, %s438_s30 }
 0x156   :  { %p445_p11 = por %p444_p10, %p443_p9 }
 0x158   :  { %p446_p12 = pnand %p445_p11, %p439_p8 }
 0x15a   :  { %449 = shalt.err (!%p446_p12)
}
 0x15b   :  { %s450_s7 = scalar_lea.hbm %s562_s3, 16 }
 0x15c   :  { %p451_p13 = scmp.ne.s32.totalorder %s562_s3, %s450_s7  ;;  %p454_p0 = scmp.lt.u32.totalorder %s450_s7, %s562_s3 }
 0x15e   :  { %p456_p1 = pnand %p454_p0, %p451_p13 }
 0x160   :  { %459 = shalt.err (!%p456_p1)
}
 0x161   :  { %280 = dma.vmem_to_hbm [thread:$0]  %s278_s29, 16, %s562_s3, [#allocation5]  }
 0x162   :  { %462 = dma.done.wait [#allocation5], 32  }
 0x163   :  { %463 = vsyncadd [#allocation5], 4294967264 }
 0x164   :  { %284 = vsyncpa [#allocation4], 1 }
 0x165   :  { %285 = vsyncpa [#allocation5], 1 }

</bundles_post_ra>
